<compile_context>
chip_gen: v6e
topology: v6e:2x2x1
jax: 0.10.0
libtpu: 0.0.40
codegen_flags: <defaults>
</compile_context>

<pallas_src>
import functools

import jax
import jax.numpy as jnp
from jax.experimental import pallas as pl
from jax.experimental.pallas import tpu as pltpu


# ----------------------------------------------------------------------------
# Kernels
# ----------------------------------------------------------------------------
def encoder_concat_kernel(pos_ref, xn_ref, w1_ref, b1_ref, w2_ref, b2_ref,
                          o_ref):
    """Geometric invariants -> Linear(3,16)+ReLU+Linear(16,32), fused with the
    concat [data.x | geo_feat] so the conv1 input slab is written once."""
    pos = pos_ref[...]                                   # [N, 3]
    px = pos[:, 0:1]
    py = pos[:, 1:2]
    pz = pos[:, 2:3]
    inv0 = jnp.sqrt(px * px + py * py + pz * pz)         # ||pos||
    inv1 = px * px + py * py                             # x^2 + y^2
    inv2 = px * py                                       # x * y
    w1 = w1_ref[...]                                     # [3,16] -> VPU bcast
    h = inv0 * w1[0:1, :] + inv1 * w1[1:2, :] + inv2 * w1[2:3, :] + b1_ref[...]
    h = jnp.maximum(h, 0.0)
    geo = jnp.dot(h, w2_ref[...],
                  preferred_element_type=jnp.float32) + b2_ref[...]   # [N,32]
    nd = xn_ref.shape[1]
    o_ref[:, :nd] = xn_ref[...]
    o_ref[:, nd:] = geo


def _gcn_core(src_ref, dst_ref, x_ref, ea_ref, deg_inv_ref,
              em_w1_ref, em_b1_ref, em_g_ref, em_bt_ref, em_w2_ref, em_b2_ref,
              ep_w_ref, ep_b_ref, nm_w_ref, nm_b_ref,
              ew_ref, acc_ref, num_edges):
    """Shared GeoGCNConv body: edge MLP + gather/scatter mean + update."""
    # ---- edge MLP: Linear(5,16) on the VPU (K=5), LayerNorm(16), ReLU,
    #      Linear(16, in_dim).  Result stays in VMEM scratch (never hits HBM).
    ea = ea_ref[...]                                     # [E, 5]
    w1 = em_w1_ref[...]                                  # [5, 16]
    h = em_b1_ref[...] + ea[:, 0:1] * w1[0:1, :]
    h = h + ea[:, 1:2] * w1[1:2, :]
    h = h + ea[:, 2:3] * w1[2:3, :]
    h = h + ea[:, 3:4] * w1[3:4, :]
    h = h + ea[:, 4:5] * w1[4:5, :]
    mu = jnp.mean(h, axis=-1, keepdims=True)
    var = jnp.mean((h - mu) ** 2, axis=-1, keepdims=True)
    h = (h - mu) * jax.lax.rsqrt(var + 1e-5) * em_g_ref[...] + em_bt_ref[...]
    h = jnp.maximum(h, 0.0)
    ew_ref[...] = (jnp.dot(h, em_w2_ref[...],
                           preferred_element_type=jnp.float32)
                   + em_b2_ref[...])                     # [E, in_dim]

    # ---- message + mean aggregation in the in_dim space.
    # edge_proj is affine, so  mean_e edge_proj(x_src*ew) ==
    # edge_proj(mean_e x_src*ew)  for nodes with >=1 incoming edge; the scatter
    # therefore runs on [*, in_dim] rows and edge_proj becomes one MXU matmul.
    acc_ref[...] = jnp.zeros_like(acc_ref)

    @pl.loop(0, num_edges)
    def _(e):
        s = src_ref[e]                                   # source node  (x_j)
        d = dst_ref[e]                                   # target node
        acc_ref[d] = acc_ref[d] + x_ref[s] * ew_ref[e]

    deg_inv = deg_inv_ref[...]                           # [N,1], 0 if isolated
    pre = acc_ref[...] * deg_inv                         # mean over in-edges

    # ---- edge_proj(aggregated) + node_mlp(x): bf16 MXU, f32 accumulate.
    aggr = jnp.dot(pre.astype(jnp.bfloat16),
                   ep_w_ref[...].astype(jnp.bfloat16),
                   preferred_element_type=jnp.float32)
    aggr = aggr + ep_b_ref[...] * (deg_inv > 0.0).astype(jnp.float32)
    upd = jnp.dot(x_ref[...].astype(jnp.bfloat16),
                  nm_w_ref[...].astype(jnp.bfloat16),
                  preferred_element_type=jnp.float32) + nm_b_ref[...]
    return upd + aggr                                    # [N, out_dim]


def gcn_bn_relu_kernel(src_ref, dst_ref, x_ref, ea_ref, deg_inv_ref,
                       em_w1_ref, em_b1_ref, em_g_ref, em_bt_ref,
                       em_w2_ref, em_b2_ref, ep_w_ref, ep_b_ref,
                       nm_w_ref, nm_b_ref, bn_g_ref, bn_b_ref,
                       o_ref, ew_ref, acc_ref, *, num_edges):
    out = _gcn_core(src_ref, dst_ref, x_ref, ea_ref, deg_inv_ref,
                    em_w1_ref, em_b1_ref, em_g_ref, em_bt_ref, em_w2_ref,
                    em_b2_ref, ep_w_ref, ep_b_ref, nm_w_ref, nm_b_ref,
                    ew_ref, acc_ref, num_edges)
    # BatchNorm1d (training-mode batch statistics, f32) + ReLU epilogue.
    # TODO(synk): eval-mode BatchNorm with running stats is not modeled.
    mu = jnp.mean(out, axis=0, keepdims=True)
    var = jnp.mean((out - mu) ** 2, axis=0, keepdims=True)
    xn = (out - mu) * jax.lax.rsqrt(var + 1e-5)
    o_ref[...] = jnp.maximum(xn * bn_g_ref[...] + bn_b_ref[...], 0.0)


def gcn_pool_kernel(src_ref, dst_ref, batch_ref, x_ref, ea_ref, deg_inv_ref,
                    em_w1_ref, em_b1_ref, em_g_ref, em_bt_ref,
                    em_w2_ref, em_b2_ref, ep_w_ref, ep_b_ref,
                    nm_w_ref, nm_b_ref, pool_scale_ref,
                    o_ref, ew_ref, acc_ref, xout_ref, *, num_edges, num_nodes):
    out = _gcn_core(src_ref, dst_ref, x_ref, ea_ref, deg_inv_ref,
                    em_w1_ref, em_b1_ref, em_g_ref, em_bt_ref, em_w2_ref,
                    em_b2_ref, ep_w_ref, ep_b_ref, nm_w_ref, nm_b_ref,
                    ew_ref, acc_ref, num_edges)
    # Global mean pooling fused as a per-graph segment mean epilogue: the
    # [N,out] conv3 activations never leave VMEM.
    xout_ref[...] = out
    o_ref[...] = jnp.zeros_like(o_ref)

    @pl.loop(0, num_nodes)
    def _(n):
        g = batch_ref[n]
        o_ref[g] = o_ref[g] + xout_ref[n]

    o_ref[...] = o_ref[...] * pool_scale_ref[...]


# ----------------------------------------------------------------------------
# pallas_call wrappers (single-block VMEM residency at these sizes)
# ----------------------------------------------------------------------------
def _vmem():
    return pl.BlockSpec(memory_space=pltpu.MemorySpace.VMEM)


def _smem():
    return pl.BlockSpec(memory_space=pltpu.MemorySpace.SMEM)


def encoder_concat(pos, x_nodes, enc):
    e1_w, e1_b, e2_w, e2_b = enc
    n = pos.shape[0]
    feat = x_nodes.shape[1] + e2_w.shape[1]
    return pl.pallas_call(
        encoder_concat_kernel,
        out_shape=jax.ShapeDtypeStruct((n, feat), jnp.float32),
        in_specs=[_vmem()] * 6,
        out_specs=_vmem(),
    )(pos, x_nodes, e1_w, e1_b, e2_w, e2_b)


def gcn_bn_relu(x, edge_attr, src, dst, deg_inv, p, bn_g, bn_b):
    n, in_dim = x.shape
    e = edge_attr.shape[0]
    out_dim = p["nm_w"].shape[1]
    kernel = functools.partial(gcn_bn_relu_kernel, num_edges=e)
    return pl.pallas_call(
        kernel,
        out_shape=jax.ShapeDtypeStruct((n, out_dim), jnp.float32),
        in_specs=[_smem(), _smem()] + [_vmem()] * 15,
        out_specs=_vmem(),
        scratch_shapes=[pltpu.VMEM((e, in_dim), jnp.float32),   # edge weights
                        pltpu.VMEM((n, in_dim), jnp.float32)],  # aggregation
    )(src, dst, x, edge_attr, deg_inv,
      p["em_w1"], p["em_b1"], p["em_g"], p["em_bt"], p["em_w2"], p["em_b2"],
      p["ep_w"], p["ep_b"], p["nm_w"], p["nm_b"], bn_g, bn_b)


def gcn_pool(x, edge_attr, src, dst, deg_inv, batch, pool_scale, p,
             num_graphs):
    n, in_dim = x.shape
    e = edge_attr.shape[0]
    out_dim = p["nm_w"].shape[1]
    kernel = functools.partial(gcn_pool_kernel, num_edges=e, num_nodes=n)
    return pl.pallas_call(
        kernel,
        out_shape=jax.ShapeDtypeStruct((num_graphs, out_dim), jnp.float32),
        in_specs=[_smem()] * 3 + [_vmem()] * 14,
        out_specs=_vmem(),
        scratch_shapes=[pltpu.VMEM((e, in_dim), jnp.float32),   # edge weights
                        pltpu.VMEM((n, in_dim), jnp.float32),   # aggregation
                        pltpu.VMEM((n, out_dim), jnp.float32)], # conv3 out
    )(src, dst, batch, x, edge_attr, deg_inv,
      p["em_w1"], p["em_b1"], p["em_g"], p["em_bt"], p["em_w2"], p["em_b2"],
      p["ep_w"], p["ep_b"], p["nm_w"], p["nm_b"], pool_scale)


def protein_gnn_forward(params, x_nodes, pos, edge_index, edge_attr, batch,
                        num_graphs):
    n = x_nodes.shape[0]
    src = edge_index[0].astype(jnp.int32)
    dst = edge_index[1].astype(jnp.int32)
    # tiny glue: in-degree inverse (aggr='mean') and per-graph node counts
    deg = jnp.zeros((n,), jnp.float32).at[dst].add(1.0)
    deg_inv = jnp.where(deg > 0.0, 1.0 / jnp.maximum(deg, 1.0), 0.0)
    deg_inv = deg_inv.reshape(n, 1)
    cnt = jnp.zeros((num_graphs,), jnp.float32).at[batch].add(1.0)
    pool_scale = (1.0 / jnp.maximum(cnt, 1.0)).reshape(num_graphs, 1)

    x = encoder_concat(pos, x_nodes, params["enc"])
    x = gcn_bn_relu(x, edge_attr, src, dst, deg_inv, params["conv1"],
                    *params["bn1"])
    x = gcn_bn_relu(x, edge_attr, src, dst, deg_inv, params["conv2"],
                    *params["bn2"])
    return gcn_pool(x, edge_attr, src, dst, deg_inv, batch, pool_scale,
                    params["conv3"], num_graphs)


# ----------------------------------------------------------------------------
# deterministic parameter init (PyTorch-like shapes)
# ----------------------------------------------------------------------------
def init_linear(key, d_in, d_out, scale=0.1):
    kw, kb = jax.random.split(key)
    w = scale * jax.random.normal(kw, (d_in, d_out), jnp.float32)
    b = scale * jax.random.normal(kb, (1, d_out), jnp.float32)
    return w, b


def init_gcn(key, in_dim, out_dim):
    ks = jax.random.split(key, 4)
    em_w1, em_b1 = init_linear(ks[0], 5, 16)
    em_w2, em_b2 = init_linear(ks[1], 16, in_dim)
    ep_w, ep_b = init_linear(ks[2], in_dim, out_dim)
    nm_w, nm_b = init_linear(ks[3], in_dim, out_dim)
    return dict(em_w1=em_w1, em_b1=em_b1,
                em_g=jnp.ones((1, 16), jnp.float32),
                em_bt=jnp.zeros((1, 16), jnp.float32),
                em_w2=em_w2, em_b2=em_b2,
                ep_w=ep_w, ep_b=ep_b, nm_w=nm_w, nm_b=nm_b)


def init_params(key, node_dim, hidden_dim, out_dim):
    ks = jax.random.split(key, 5)
    e1_w, e1_b = init_linear(ks[0], 3, 16)
    e2_w, e2_b = init_linear(ks[1], 16, 32)
    return dict(
        enc=(e1_w, e1_b, e2_w, e2_b),
        conv1=init_gcn(ks[2], node_dim + 32, hidden_dim),
        conv2=init_gcn(ks[3], hidden_dim, hidden_dim),
        conv3=init_gcn(ks[4], hidden_dim, out_dim),
        bn1=(jnp.ones((1, hidden_dim), jnp.float32),
             jnp.zeros((1, hidden_dim), jnp.float32)),
        bn2=(jnp.ones((1, hidden_dim), jnp.float32),
             jnp.zeros((1, hidden_dim), jnp.float32)),
    )


# ----------------------------------------------------------------------------
# main
# ----------------------------------------------------------------------------
if __name__ == "__main__":
    key = jax.random.PRNGKey(0)
    node_dim, hidden_dim, out_dim = 24, 128, 256     # PyTorch defaults
    nodes_per_graph, num_graphs = 6, 2
    N = nodes_per_graph * num_graphs

    # bidirectional ring graph inside each of the 2 graphs
    src_list, dst_list = [], []
    for g in range(num_graphs):
        off = g * nodes_per_graph
        for i in range(nodes_per_graph):
            j = (i + 1) % nodes_per_graph
            src_list += [off + i, off + j]
            dst_list += [off + j, off + i]
    edge_index = jnp.array([src_list, dst_list], dtype=jnp.int32)   # [2, E]
    E = edge_index.shape[1]

    k1, k2, k3, k4 = jax.random.split(key, 4)
    x_nodes = jax.random.normal(k1, (N, node_dim), jnp.float32)     # data.x
    pos = jax.random.normal(k2, (N, 3), jnp.float32)                # data.pos
    edge_attr = jax.random.normal(k3, (E, 5), jnp.float32)          # edge_attr
    batch = jnp.repeat(jnp.arange(num_graphs, dtype=jnp.int32),
                       nodes_per_graph)                             # data.batch

    params = init_params(k4, node_dim, hidden_dim, out_dim)

    out = protein_gnn_forward(params, x_nodes, pos, edge_index, edge_attr,
                              batch, num_graphs)
    out = jax.block_until_ready(out)
    assert out.shape == (num_graphs, out_dim)
    assert bool(jnp.all(jnp.isfinite(out)))
    print("KERNEL_OK")
</pallas_src>

<mosaic_0001>
module attributes {stable_mosaic.version = 11 : i64} {
  func.func @encoder_concat_kernel(%arg0: memref<12x3xf32, #tpu.memory_space<vmem>>, %arg1: memref<12x24xf32, #tpu.memory_space<vmem>>, %arg2: memref<3x16xf32, #tpu.memory_space<vmem>>, %arg3: memref<1x16xf32, #tpu.memory_space<vmem>>, %arg4: memref<16x32xf32, #tpu.memory_space<vmem>>, %arg5: memref<1x32xf32, #tpu.memory_space<vmem>>, %arg6: memref<12x56xf32, #tpu.memory_space<vmem>>) attributes {dimension_semantics = [], scalar_prefetch = 0 : i64, scratch_operands = 0 : i64, tpu.core_type = #tpu.core_type<tc>} {
    %c0 = arith.constant 0 : index
    %c0_0 = arith.constant 0 : index
    %0 = vector.load %arg0[%c0, %c0_0] : memref<12x3xf32, #tpu.memory_space<vmem>>, vector<12x3xf32>
    %1 = vector.extract_strided_slice %0 {offsets = [0, 0], sizes = [12, 1], strides = [1, 1]} : vector<12x3xf32> to vector<12x1xf32>
    %2 = vector.extract_strided_slice %0 {offsets = [0, 1], sizes = [12, 1], strides = [1, 1]} : vector<12x3xf32> to vector<12x1xf32>
    %3 = vector.extract_strided_slice %0 {offsets = [0, 2], sizes = [12, 1], strides = [1, 1]} : vector<12x3xf32> to vector<12x1xf32>
    %4 = arith.mulf %1, %1 : vector<12x1xf32>
    %5 = arith.mulf %2, %2 : vector<12x1xf32>
    %6 = arith.addf %4, %5 : vector<12x1xf32>
    %7 = arith.mulf %3, %3 : vector<12x1xf32>
    %8 = arith.addf %6, %7 : vector<12x1xf32>
    %9 = math.sqrt %8 : vector<12x1xf32>
    %10 = arith.mulf %1, %1 : vector<12x1xf32>
    %11 = arith.mulf %2, %2 : vector<12x1xf32>
    %12 = arith.addf %10, %11 : vector<12x1xf32>
    %13 = arith.mulf %1, %2 : vector<12x1xf32>
    %c0_1 = arith.constant 0 : index
    %c0_2 = arith.constant 0 : index
    %14 = vector.load %arg2[%c0_1, %c0_2] : memref<3x16xf32, #tpu.memory_space<vmem>>, vector<3x16xf32>
    %15 = vector.extract_strided_slice %14 {offsets = [0, 0], sizes = [1, 16], strides = [1, 1]} : vector<3x16xf32> to vector<1x16xf32>
    %16 = vector.broadcast %9 : vector<12x1xf32> to vector<12x16xf32>
    %17 = vector.broadcast %15 : vector<1x16xf32> to vector<12x16xf32>
    %18 = arith.mulf %16, %17 : vector<12x16xf32>
    %19 = vector.extract_strided_slice %14 {offsets = [1, 0], sizes = [1, 16], strides = [1, 1]} : vector<3x16xf32> to vector<1x16xf32>
    %20 = vector.broadcast %12 : vector<12x1xf32> to vector<12x16xf32>
    %21 = vector.broadcast %19 : vector<1x16xf32> to vector<12x16xf32>
    %22 = arith.mulf %20, %21 : vector<12x16xf32>
    %23 = arith.addf %18, %22 : vector<12x16xf32>
    %24 = vector.extract_strided_slice %14 {offsets = [2, 0], sizes = [1, 16], strides = [1, 1]} : vector<3x16xf32> to vector<1x16xf32>
    %25 = vector.broadcast %13 : vector<12x1xf32> to vector<12x16xf32>
    %26 = vector.broadcast %24 : vector<1x16xf32> to vector<12x16xf32>
    %27 = arith.mulf %25, %26 : vector<12x16xf32>
    %28 = arith.addf %23, %27 : vector<12x16xf32>
    %c0_3 = arith.constant 0 : index
    %c0_4 = arith.constant 0 : index
    %29 = vector.load %arg3[%c0_3, %c0_4] : memref<1x16xf32, #tpu.memory_space<vmem>>, vector<1x16xf32>
    %30 = vector.broadcast %29 : vector<1x16xf32> to vector<12x16xf32>
    %31 = arith.addf %28, %30 : vector<12x16xf32>
    %cst = arith.constant 0.000000e+00 : f32
    %32 = vector.broadcast %cst : f32 to vector<12x16xf32>
    %33 = arith.maximumf %31, %32 : vector<12x16xf32>
    %c0_5 = arith.constant 0 : index
    %c0_6 = arith.constant 0 : index
    %34 = vector.load %arg4[%c0_5, %c0_6] : memref<16x32xf32, #tpu.memory_space<vmem>>, vector<16x32xf32>
    %cst_7 = arith.constant dense<0.000000e+00> : vector<12x32xf32>
    %35 = tpu.matmul %33, %34, %cst_7 {dimension_numbers = #tpu.dot_dimension_numbers<[1], [0], [0], [1], [0, 0, 1, 1], [], []>} : vector<12x16xf32>, vector<16x32xf32>, vector<12x32xf32> -> vector<12x32xf32>
    %c0_8 = arith.constant 0 : index
    %c0_9 = arith.constant 0 : index
    %36 = vector.load %arg5[%c0_8, %c0_9] : memref<1x32xf32, #tpu.memory_space<vmem>>, vector<1x32xf32>
    %37 = vector.broadcast %36 : vector<1x32xf32> to vector<12x32xf32>
    %38 = arith.addf %35, %37 : vector<12x32xf32>
    %c0_10 = arith.constant 0 : index
    %c0_11 = arith.constant 0 : index
    %39 = vector.load %arg1[%c0_10, %c0_11] : memref<12x24xf32, #tpu.memory_space<vmem>>, vector<12x24xf32>
    %c0_12 = arith.constant 0 : index
    %c0_13 = arith.constant 0 : index
    %40 = vector.load %arg6[%c0_12, %c0_13] : memref<12x56xf32, #tpu.memory_space<vmem>>, vector<12x24xf32>
    tpu.vector_store %arg6[%c0_12, %c0_13], %39 {strides = array<i32>} : memref<12x56xf32, #tpu.memory_space<vmem>>, vector<12x24xf32>,
    %c0_14 = arith.constant 0 : index
    %c24 = arith.constant 24 : index
    %41 = vector.load %arg6[%c0_14, %c24] : memref<12x56xf32, #tpu.memory_space<vmem>>, vector<12x32xf32>
    tpu.vector_store %arg6[%c0_14, %c24], %38 {strides = array<i32>} : memref<12x56xf32, #tpu.memory_space<vmem>>, vector<12x32xf32>,
    return
  }
}

</mosaic_0001>

<bundles_post_ra>
// kernel: tpu_custom_call.1
= control target key start
LH: loop header
LB: loop body
LE: loop exit
PB: predicated region body
PF: predicated region fallthrough
CT: control target
= control target key end

     0   :  { %11 = vsyncpa [#allocation3], 0  ;;  %s423_s0 = inlined_call_operand.vmem [shape: f32[12,3], index: 0, kind: input, shape index: {}]   ;;  %s424_s1 = inlined_call_operand.vmem [shape: f32[12,24], index: 1, kind: input, shape index: {}]   ;;  %s425_s2 = inlined_call_operand.vmem [shape: f32[3,16], index: 2, kind: input, shape index: {}]   ;;  %s426_s3 = inlined_call_operand.vmem [shape: f32[1,16], index: 3, kind: input, shape index: {}]   ;;  %s427_s4 = inlined_call_operand.hbm [shape: f32[16,32], index: 4, kind: input, shape index: {}]   ;;  %s428_s5 = inlined_call_operand.vmem [shape: f32[1,32], index: 5, kind: input, shape index: {}]   ;;  %s429_s6 = inlined_call_operand.hbm [shape: f32[12,56], index: 6, kind: output, shape index: {}]  }
   0x1   :  { %12 = vsyncpa [#allocation4], 0  ;;  %s347_s21 = smov [#allocation2]  }
   0x2   :  { %s26_s22 = sshll.u32 %s347_s21, 4  ;;  %s27_s22 = int_to_ptr.vmem [resolvable:$true] %s26_s22 }
   0x3   :  { %s311_s23 = scalar_lea.vmem %s27_s22, 256  ;;  %p316_p1 = scmp.lt.s32.totalorder %s27_s22, %s27_s22 }
   0x4   :  { %p312_p0 = scmp.ne.s32.totalorder %s27_s22, %s311_s23  ;;  %p317_p2 = scmp.lt.s32.totalorder %s311_s23, %s311_s23 }
   0x6   :  { %p318_p3 = por %p317_p2, %p316_p1 }
   0x8   :  { %p319_p4 = pnand %p318_p3, %p312_p0 }
   0xa   :  { %322 = shalt.err (!%p319_p4)
}
   0xb   :  { %s348_s24 = smov 128   ;;  %s349_s25 = smov 8  }
   0xc   :  { %32 = dma.hbm_to_vmem [thread:$0]  %s427_s4, 256, %s27_s22, [#allocation3], %s348_s24, %s348_s24, %s349_s25  }
   0xd   :  { %343 = dma.done.wait [#allocation3], 256  }
   0xe   :  { %344 = vsyncadd [#allocation3], 4294967040  ;;  %v350_v0 = vmov 0   ;;  %v38_v1 = vld [vmem:[%s423_s0] sm:$0xff]  ;;  %v39_v2 = vld [vmem:[%s423_s0 + $0x8] sm:$0xf]  ;;  %v95_v29 = vlaneseq }
   0xf   :  { %297 = vset.pattern.permute.xlu1 %v350_v0  ;;  %298 = vset.pattern.permute.xlu0 %v350_v0  ;;  %v40_v3 = vmul.f32 %v38_v1, %v38_v1  ;;  %s351_s8 = smov 127   ;;  %s352_s9 = smov 126   ;;  %v41_v4 = vmul.f32 %v39_v2, %v39_v2  ;;  %v149_v27 = vld [vmem:[#allocation2 + $0x8] sm:$0xff]  ;;  %v148_v28 = vld [vmem:[#allocation2] sm:$0xff]  ;;  %vm157_vm4 = vcmask 130048   ;;  %vm243_vm5 = vcmask 191488  }
  0x10   :  { %282 = vmatprep.subr.mxu0 %v149_v27  ;;  %v96_v30 = vshrl.u32 %v95_v29, 7  ;;  %v84_v35 = vld [vmem:[%s425_s2] sm:$0x7]  ;;  %v240_v59 = vld [vmem:[%s424_s1 + $0x8] sm:$0xf]  ;;  %vm241_vm6 = vcmask 195584  }
  0x11   :  { %44 = vrot.lane.b32.xlu0 %v40_v3, %s351_s8  ;;  %52 = vrot.lane.b32.xlu1 %v40_v3, %s352_s9  ;;  %v274_v53 = vld [vmem:[%s426_s3] ss:$0 sm:$0xff]  ;;  %244 = vst.msk [vmem:[#allocation5 + $0x8] sm:$0xf] %vm243_vm5, %v240_v59  ;;  %s353_s16 = smov 24   ;;  %vm255_vm7 = vcmask 453824  }
  0x12   :  { %283 = vmatpush3.msra.mxu0 %v149_v27  ;;  %v97_v32 = vsub.s32 0, %v96_v30  ;;  %v113_v33 = vsub.s32 1, %v96_v30  ;;  %v131_v34 = vsub.s32 2, %v96_v30  ;;  %v239_v60 = vld [vmem:[%s424_s1] sm:$0xff]  ;;  %s354_s17 = smov [#allocation5]   ;;  %vm253_vm8 = vcmask 457920  }
  0x13   :  { %284 = vmatprep.subr.mxu0 %v148_v28  ;;  %242 = vst.msk [vmem:[#allocation5] sm:$0xff] %vm241_vm6, %v239_v60  ;;  %v275_v61 = vld [vmem:[%s428_s5] ss:$0 sm:$0xff]  ;;  %s262_s18 = sshll.u32 %s354_s17, 4  ;;  %s263_s18 = int_to_ptr.vmem [resolvable:$true] %s262_s18 }
  0x14   :  { %285 = vmatpush3.msra.mxu0 %v148_v28  ;;  %v98_v38 = vrot.slane %v84_v35, %v97_v32  ;;  %v114_v39 = vrot.slane %v84_v35, %v113_v33  ;;  %v132_v40 = vrot.slane %v84_v35, %v131_v34  ;;  %s323_s1 = scalar_lea.vmem %s263_s18, 256  ;;  %p328_p6 = scmp.lt.s32.totalorder %s263_s18, %s263_s18 }
  0x15   :  { %46 = vrot.lane.b32.xlu0 %v41_v4, %s351_s8  ;;  %54 = vrot.lane.b32.xlu1 %v41_v4, %s352_s9  ;;  %p324_p5 = scmp.ne.s32.totalorder %s263_s18, %s323_s1  ;;  %p329_p7 = scmp.lt.s32.totalorder %s323_s1, %s323_s1 }
  0x17   :  { %p330_p8 = por %p329_p7, %p328_p6 }
  0x19   :  { %78 = vrot.lane.b32.xlu1 %v39_v2, %s351_s8  ;;  %76 = vrot.lane.b32.xlu0 %v38_v1, %s351_s8  ;;  %p331_p9 = pnand %p330_p8, %p324_p5 }
  0x83   :  { %v45_v5 = vpop.permute.xlu0 %44  ;;  %v53_v6 = vpop.permute.xlu1 %52 }
  0x84   :  { %v50_v7 = vadd.f32 %v45_v5, %v40_v3 }
  0x86   :  { %v58_v8 = vadd.f32 %v53_v6, %v50_v7  ;;  %103 = vperm.xlu1 %297, %v50_v7  }
  0x87   :  { %v47_v9 = vpop.permute.xlu0 %46  ;;  %v55_v10 = vpop.permute.xlu1 %54 }
  0x88   :  { %299 = vrsqrt.f32 %v58_v8  ;;  %v51_v11 = vadd.f32 %v47_v9, %v41_v4  ;;  %vm62_vm0 = vcmp.eq.f32.partialorder %v58_v8, inf  ;;  %v65_v15 = vand.u32 2147483648, %v58_v8 }
  0x89   :  { %vm64_vm1 = vcmp.eq.f32.partialorder %v58_v8, 0.0 }
  0x8a   :  { %v59_v12 = vadd.f32 %v55_v10, %v51_v11  ;;  %108 = vperm.xlu0 %298, %v51_v11  }
  0x8b   :  { %v79_v16 = vpop.permute.xlu1 %78  ;;  %v77_v23 = vpop.permute.xlu0 %76 }
  0x8c   :  { %301 = vrsqrt.f32 %v59_v12  ;;  %v83_v20 = vmul.f32 %v79_v16, %v39_v2  ;;  %vm69_vm2 = vcmp.eq.f32.partialorder %v59_v12, inf  ;;  %v72_v22 = vand.u32 2147483648, %v59_v12 }
  0x8d   :  { %vm71_vm3 = vcmp.eq.f32.partialorder %v59_v12, 0.0  ;;  %v82_v26 = vmul.f32 %v77_v23, %v38_v1 }
  0x95   :  { %v300_v13 = vpop.eup %299 }
  0x96   :  { %v61_v14 = vmul.f32 %v300_v13, %v58_v8 }
  0x98   :  { %v63_v17 = vsel %vm62_vm0, %v58_v8, %v61_v14 }
  0x99   :  { %v302_v18 = vpop.eup %301  ;;  %v66_v19 = vsel %vm64_vm1, %v65_v15, %v63_v17 }
  0x9a   :  { %87 = vperm.xlu0 %298, %v66_v19   ;;  %v68_v21 = vmul.f32 %v302_v18, %v59_v12 }
  0x9c   :  { %v70_v24 = vsel %vm69_vm2, %v59_v12, %v68_v21 }
  0x9d   :  { %v73_v25 = vsel %vm71_vm3, %v72_v22, %v70_v24 }
  0x9e   :  { %126 = vperm.xlu0 %298, %v83_v20   ;;  %92 = vperm.xlu1 %297, %v73_v25  }
  0xa2   :  { %121 = vperm.xlu1 %297, %v82_v26  }
 0x101   :  { %v104_v36 = vpop.permute.xlu1 %103 }
 0x102   :  { %v115_v46 = vmul.f32 %v114_v39, %v104_v36 }
 0x105   :  { %v109_v31 = vpop.permute.xlu0 %108 }
 0x106   :  { %v116_v43 = vmul.f32 %v114_v39, %v109_v31 }
 0x115   :  { %v88_v37 = vpop.permute.xlu0 %87 }
 0x116   :  { %v99_v44 = vmul.f32 %v98_v38, %v88_v37 }
 0x118   :  { %v117_v50 = vadd.f32 %v115_v46, %v99_v44 }
 0x119   :  { %v93_v41 = vpop.permute.xlu1 %92  ;;  %v127_v42 = vpop.permute.xlu0 %126 }
 0x11a   :  { %v100_v45 = vmul.f32 %v98_v38, %v93_v41  ;;  %v134_v48 = vmul.f32 %v132_v40, %v127_v42 }
 0x11c   :  { %v118_v47 = vadd.f32 %v116_v43, %v100_v45 }
 0x11d   :  { %v122_v49 = vpop.permute.xlu1 %121 }
 0x11e   :  { %v136_v51 = vadd.f32 %v134_v48, %v118_v47  ;;  %v133_v52 = vmul.f32 %v132_v40, %v122_v49 }
 0x120   :  { %v135_v54 = vadd.f32 %v133_v52, %v117_v50  ;;  %v145_v55 = vadd.f32 %v274_v53, %v136_v51 }
 0x122   :  { %v144_v56 = vadd.f32 %v274_v53, %v135_v54  ;;  %v147_v58 = vmax.f32 %v145_v55, 0.0 }
 0x124   :  { %v146_v57 = vmax.f32 %v144_v56, 0.0 }
 0x126   :  { %286 = vmatprep.mubr.msk.f32.mxu0 %vm157_vm4, %v146_v57 }
 0x127   :  { %287 = vmatmul.mubr.msk.f32.vlgmr.msra.gmra.mxu0 %vm157_vm4, %v147_v58 }
 0x1e7   :  { %v288_v62 = vpop.f32.mrf.mxu0 }
 0x1e8   :  { %v236_v63 = vadd.f32 %v288_v62, %v275_v61 }
 0x1e9   :  { %v230_v0 = vpop.f32.mrf.mxu0 }
 0x1ea   :  { %v231_v1 = vadd.f32 %v275_v61, %v230_v0  ;;  %249 = vrot.lane.b32.xlu0 %v236_v63, %s353_s16 }
 0x1ec   :  { %247 = vrot.lane.b32.xlu1 %v231_v1, %s353_s16 }
 0x25c   :  { %v250_v2 = vpop.permute.xlu0 %249 }
 0x25d   :  { %256 = vst.msk [vmem:[#allocation5 + $0x8] sm:$0xf] %vm255_vm7, %v250_v2 }
 0x25e   :  { %v248_v3 = vpop.permute.xlu1 %247 }
 0x25f   :  { %254 = vst.msk [vmem:[#allocation5] sm:$0xff] %vm253_vm8, %v248_v3 }
 0x260   :  { %334 = shalt.err (!%p331_p9)
}
 0x261   :  { %268 = dma.vmem_to_hbm [thread:$0]  %s263_s18, 256, %s429_s6, [#allocation4], %s348_s24, %s348_s24, %s349_s25  }
 0x262   :  { %345 = dma.done.wait [#allocation4], 256  }
 0x263   :  { %346 = vsyncadd [#allocation4], 4294967040 }
 0x264   :  { %272 = vsyncpa [#allocation3], 1 }
 0x265   :  { %273 = vsyncpa [#allocation4], 1 }

</bundles_post_ra>
